<compile_context>
chip_gen: v5e
topology: v5e:2x2
jax: 0.10.0
libtpu: 0.0.40
codegen_flags: <defaults>
</compile_context>

<pallas_src>
import functools

import jax
import jax.numpy as jnp
import numpy as np
from jax.experimental import pallas as pl
from jax.experimental.pallas import tpu as pltpu

NUM_BOND_TYPE = 6
NUM_BOND_DIRECTION = 3

_X_RESIDENT_BUDGET = 8 * 1024 * 1024   # VMEM bytes allowed for the resident bf16 x slab


def _round_up(v, m):
    return ((v + m - 1) // m) * m


def _choose_tiles(n):
    """Return (N_pad, TILE_N, TILE_K); (8,128)-legal, lane-dense, tiles divide N_pad."""
    n128 = _round_up(n, 128)
    if n128 <= 512:                       # tiny graph: single block, grid (1, 1)
        return n128, n128, n128
    n_pad = _round_up(n, 512)
    tile_n = 512                          # keeps n_pad // tile_n >= 2 (v7x megacore)
    tile_k = 1024 if n_pad % 1024 == 0 else 512
    return n_pad, tile_n, tile_k


def _pad2(a, rows, cols):
    return jnp.pad(a, ((0, rows - a.shape[0]), (0, cols - a.shape[1])))


# ---------------------------------------------------------------------------
# Kernel.  grid = (row tiles i ["parallel"], reduction tiles k ["arbitrary"])
#   acc[i]  += A[i,k] @ h[k]                               (bf16 MXU, f32 accumulate)
#   out[i]   = ReLU(acc[i] @ W_fused + eemb_b1[i]) @ W2^T + b2   (f32 epilogue, last k)
# ---------------------------------------------------------------------------
def gnn_decoder_kernel(a_ref, x_ref, wf_ref, eb1_ref, w2_ref, b2_ref, out_ref,
                       acc_ref, *, tile_k, x_resident):
    k = pl.program_id(1)

    @pl.when(k == 0)
    def _():
        acc_ref[...] = jnp.zeros_like(acc_ref)

    if x_resident:
        start = pl.multiple_of(k * tile_k, tile_k)
        h = x_ref[pl.ds(start, tile_k), :]    # slice of the VMEM-resident bf16 slab
    else:
        h = x_ref[...]                        # per-k streamed bf16 tile
    acc_ref[...] += jnp.dot(a_ref[...], h, preferred_element_type=jnp.float32)

    @pl.when(k == pl.num_programs(1) - 1)
    def _():
        # Epilogue runs once per row tile -> keep it in f32 for precision.
        hid = jnp.dot(acc_ref[...], wf_ref[...], preferred_element_type=jnp.float32)
        hid = jnp.maximum(hid + eb1_ref[...], 0.0)
        out = jnp.dot(hid, w2_ref[...], preferred_element_type=jnp.float32)
        out_ref[...] = out + b2_ref[...]


def init_params(key, hidden_dim, out_dim):
    ks = jax.random.split(key, 7)
    return {
        "alpha": jnp.array(0.25, jnp.float32),                                     # PReLU init
        "w_lin": jax.random.normal(ks[0], (hidden_dim, hidden_dim), jnp.float32) * 0.1,
        "edge_emb1": jax.random.normal(ks[1], (NUM_BOND_TYPE, hidden_dim), jnp.float32) * 0.1,
        "edge_emb2": jax.random.normal(ks[2], (NUM_BOND_DIRECTION, hidden_dim), jnp.float32) * 0.1,
        "w1": jax.random.normal(ks[3], (2 * hidden_dim, hidden_dim), jnp.float32) * 0.1,
        "b1": jax.random.normal(ks[4], (2 * hidden_dim,), jnp.float32) * 0.1,
        "w2": jax.random.normal(ks[5], (out_dim, 2 * hidden_dim), jnp.float32) * 0.1,
        "b2": jax.random.normal(ks[6], (out_dim,), jnp.float32) * 0.1,
    }


def _self_loops_and_edge_emb(x, edge_index, edge_attr, params):
    """Add self loops (bond type 4, direction 0) and look up edge embeddings."""
    n = x.shape[0]
    loops = jnp.arange(n, dtype=edge_index.dtype)
    src = jnp.concatenate([edge_index[0], loops])
    dst = jnp.concatenate([edge_index[1], loops])
    loop_attr = jnp.stack([jnp.full((n,), 4, edge_attr.dtype),
                           jnp.zeros((n,), edge_attr.dtype)], axis=1)
    ea = jnp.concatenate([edge_attr, loop_attr], axis=0)
    edge_emb = params["edge_emb1"][ea[:, 0]] + params["edge_emb2"][ea[:, 1]]       # [E+N, H]
    return src, dst, edge_emb


@jax.jit
def gnn_decoder_forward(x, edge_index, edge_attr, params):
    n, h_dim = x.shape
    out_dim = params["w2"].shape[0]
    n_pad, tile_n, tile_k = _choose_tiles(n)
    h_pad = _round_up(h_dim, 128)
    h2_pad = _round_up(2 * h_dim, 128)
    o_pad = _round_up(out_dim, 128)

    src, dst, edge_emb = _self_loops_and_edge_emb(x, edge_index, edge_attr, params)

    # PReLU pre-activation in the wrapper (cheap, fully-hidden XLA elementwise pass),
    # cast to bf16 once so the kernel streams half the bytes and never recomputes it.
    h = jnp.where(x > 0, x, params["alpha"] * x)
    h_p = _pad2(h, n_pad, h_pad).astype(jnp.bfloat16)

    # Dense adjacency with edge multiplicity, built directly in bf16 (counts <= 256
    # are exact in bf16; always true for molecular graphs).
    adj = (jnp.zeros((n_pad, n_pad), jnp.bfloat16)
           .at[dst, src].add(jnp.ones(dst.shape, jnp.bfloat16)))

    # Aggregated edge-embedding term, pre-pushed through the MLP's first layer + b1.
    agg_eemb = jax.ops.segment_sum(edge_emb, dst, num_segments=n)                  # [N, H]
    eemb_b1 = agg_eemb @ params["w1"].T + params["b1"][None, :]                    # [N, 2H]
    # Fold Linear(hidden, hidden, bias=False) into the MLP's first layer (f32 epilogue).
    w_fused = params["w_lin"].T @ params["w1"].T                                   # [H, 2H]

    wf_p = _pad2(w_fused, h_pad, h2_pad)                                           # f32
    eb_p = _pad2(eemb_b1, n_pad, h2_pad)                                           # f32
    w2_p = _pad2(params["w2"].T, h2_pad, o_pad)                                    # f32
    b2_p = jnp.pad(params["b2"], (0, o_pad - out_dim)).reshape(1, o_pad)           # f32

    # Keep the whole pre-activated x slab resident in VMEM when it fits the budget.
    x_resident = (n_pad * h_pad * 2) <= _X_RESIDENT_BUDGET
    if x_resident:
        x_spec = pl.BlockSpec((n_pad, h_pad), lambda i, k: (0, 0))   # constant block -> no re-DMA
    else:
        x_spec = pl.BlockSpec((tile_k, h_pad), lambda i, k: (k, 0))

    kern = functools.partial(gnn_decoder_kernel, tile_k=tile_k, x_resident=x_resident)
    grid = (n_pad // tile_n, n_pad // tile_k)

    out = pl.pallas_call(
        kern,
        out_shape=jax.ShapeDtypeStruct((n_pad, o_pad), jnp.float32),
        grid_spec=pltpu.PrefetchScalarGridSpec(
            num_scalar_prefetch=0,
            grid=grid,
            in_specs=[
                pl.BlockSpec((tile_n, tile_k), lambda i, k: (i, k)),       # A (bf16)
                x_spec,                                                    # h = PReLU(x) (bf16)
                pl.BlockSpec((h_pad, h2_pad), lambda i, k: (0, 0)),        # W_lin^T @ W1^T (f32)
                pl.BlockSpec((tile_n, h2_pad), lambda i, k: (i, 0)),       # agg_eemb@W1^T + b1
                pl.BlockSpec((h2_pad, o_pad), lambda i, k: (0, 0)),        # W2^T (f32)
                pl.BlockSpec((1, o_pad), lambda i, k: (0, 0)),             # b2
            ],
            out_specs=pl.BlockSpec((tile_n, o_pad), lambda i, k: (i, 0)),
            scratch_shapes=[pltpu.VMEM((tile_n, h_pad), jnp.float32)],
        ),
        compiler_params=pltpu.CompilerParams(
            dimension_semantics=("parallel", "arbitrary"),
            vmem_limit_bytes=32 * 1024 * 1024),
    )(adj, h_p, wf_p, eb_p, w2_p, b2_p)
    return out[:n, :out_dim]


def gnn_decoder_reference(x, edge_index, edge_attr, params):
    """Pure-JAX f32 reference mirroring the PyTorch semantics."""
    n = x.shape[0]
    src, dst, edge_emb = _self_loops_and_edge_emb(x, edge_index, edge_attr, params)
    a = params["alpha"]
    h = jnp.where(x > 0, x, a * x)
    h = h @ params["w_lin"].T
    msg = h[src] + edge_emb
    aggr = jax.ops.segment_sum(msg, dst, num_segments=n)
    hid = jnp.maximum(aggr @ params["w1"].T + params["b1"], 0.0)
    return hid @ params["w2"].T + params["b2"]


if __name__ == "__main__":
    key = jax.random.PRNGKey(0)

    def run_case(case_key, n_nodes, hidden, out_dim, n_edges):
        k_x, k_ei, k_bt, k_bd, k_p = jax.random.split(case_key, 5)
        x = jax.random.normal(k_x, (n_nodes, hidden), jnp.float32)
        edge_index = jax.random.randint(k_ei, (2, n_edges), 0, n_nodes, jnp.int32)
        edge_attr = jnp.stack(
            [jax.random.randint(k_bt, (n_edges,), 0, NUM_BOND_TYPE - 2, jnp.int32),
             jax.random.randint(k_bd, (n_edges,), 0, NUM_BOND_DIRECTION, jnp.int32)],
            axis=1)
        params = init_params(k_p, hidden, out_dim)

        out = jax.block_until_ready(gnn_decoder_forward(x, edge_index, edge_attr, params))
        ref = gnn_decoder_reference(x, edge_index, edge_attr, params)
        # bf16 MXU operands on the A@PReLU(x) contraction (f32 accumulate + f32 epilogue)
        # -> loosened tolerance vs. the pure-f32 reference.
        np.testing.assert_allclose(np.asarray(out), np.asarray(ref), rtol=3e-2, atol=3e-2)

    k1, k2 = jax.random.split(key)
    run_case(k1, 8, 32, 16, 12)        # tiny molecule: single lane-dense block, grid (1, 1)
    run_case(k2, 600, 32, 16, 2400)    # batched graph: n_pad=1024, tiles (512, 1024), grid (2, 1)
    print("KERNEL_OK")
</pallas_src>

<mosaic_0001>
module attributes {stable_mosaic.version = 11 : i64} {
  func.func @gnn_decoder_kernel(%arg0: i32, %arg1: i32, %arg2: memref<128x128xbf16, #tpu.memory_space<vmem>>, %arg3: memref<128x128xbf16, #tpu.memory_space<vmem>>, %arg4: memref<128x128xf32, #tpu.memory_space<vmem>>, %arg5: memref<128x128xf32, #tpu.memory_space<vmem>>, %arg6: memref<128x128xf32, #tpu.memory_space<vmem>>, %arg7: memref<1x128xf32, #tpu.memory_space<vmem>>, %arg8: memref<128x128xf32, #tpu.memory_space<vmem>>, %arg9: memref<128x128xf32, #tpu.memory_space<vmem>>) attributes {dimension_semantics = [#tpu.dimension_semantics<parallel>, #tpu.dimension_semantics<arbitrary>], iteration_bounds = array<i64: 1, 1>, scalar_prefetch = 0 : i64, scratch_operands = 1 : i64, tpu.core_type = #tpu.core_type<tc>, window_params = [{transform_indices = @transform_0, window_bounds = array<i64: 128, 128>}, {pipeline_mode = #tpu.pipeline_mode<synchronous>, transform_indices = @transform_1, window_bounds = array<i64: 128, 128>}, {pipeline_mode = #tpu.pipeline_mode<synchronous>, transform_indices = @transform_2, window_bounds = array<i64: 128, 128>}, {transform_indices = @transform_3, window_bounds = array<i64: 128, 128>}, {pipeline_mode = #tpu.pipeline_mode<synchronous>, transform_indices = @transform_4, window_bounds = array<i64: 128, 128>}, {pipeline_mode = #tpu.pipeline_mode<synchronous>, transform_indices = @transform_5, window_bounds = array<i64: 1, 128>}, {transform_indices = @transform_6, window_bounds = array<i64: 128, 128>}]} {
    %c0_i32 = arith.constant 0 : i32
    %0 = arith.cmpi eq, %arg1, %c0_i32 : i32
    %1 = arith.extui %0 : i1 to i32
    %c0_i32_0 = arith.constant 0 : i32
    %2 = arith.cmpi ne, %1, %c0_i32_0 : i32
    scf.if %2 {
      %cst_9 = arith.constant 0.000000e+00 : f32
      %15 = vector.broadcast %cst_9 : f32 to vector<128x128xf32>
      %c0_10 = arith.constant 0 : index
      %c0_11 = arith.constant 0 : index
      %16 = vector.load %arg9[%c0_10, %c0_11] : memref<128x128xf32, #tpu.memory_space<vmem>>, vector<128x128xf32>
      tpu.vector_store %arg9[%c0_10, %c0_11], %15 {strides = array<i32>} : memref<128x128xf32, #tpu.memory_space<vmem>>, vector<128x128xf32>,
    } else {
    }
    %c128_i32 = arith.constant 128 : i32
    %3 = arith.muli %arg1, %c128_i32 : i32
    %4 = tpu.assume_multiple %3, 128 : i32
    %5 = arith.index_cast %4 : i32 to index
    %c0 = arith.constant 0 : index
    %6 = vector.load %arg3[%5, %c0] : memref<128x128xbf16, #tpu.memory_space<vmem>>, vector<128x128xbf16>
    %c0_1 = arith.constant 0 : index
    %c0_2 = arith.constant 0 : index
    %7 = vector.load %arg9[%c0_1, %c0_2] : memref<128x128xf32, #tpu.memory_space<vmem>>, vector<128x128xf32>
    %c0_3 = arith.constant 0 : index
    %c0_4 = arith.constant 0 : index
    %8 = vector.load %arg2[%c0_3, %c0_4] : memref<128x128xbf16, #tpu.memory_space<vmem>>, vector<128x128xbf16>
    %cst = arith.constant dense<0.000000e+00> : vector<128x128xf32>
    %9 = tpu.matmul %8, %6, %cst {dimension_numbers = #tpu.dot_dimension_numbers<[1], [0], [0], [1], [0, 0, 1, 1], [], []>} : vector<128x128xbf16>, vector<128x128xbf16>, vector<128x128xf32> -> vector<128x128xf32>
    %10 = arith.addf %7, %9 : vector<128x128xf32>
    %c0_5 = arith.constant 0 : index
    %c0_6 = arith.constant 0 : index
    %11 = vector.load %arg9[%c0_5, %c0_6] : memref<128x128xf32, #tpu.memory_space<vmem>>, vector<128x128xf32>
    tpu.vector_store %arg9[%c0_5, %c0_6], %10 {strides = array<i32>} : memref<128x128xf32, #tpu.memory_space<vmem>>, vector<128x128xf32>,
    %c0_i32_7 = arith.constant 0 : i32
    %12 = arith.cmpi eq, %arg1, %c0_i32_7 : i32
    %13 = arith.extui %12 : i1 to i32
    %c0_i32_8 = arith.constant 0 : i32
    %14 = arith.cmpi ne, %13, %c0_i32_8 : i32
    scf.if %14 {
      %c0_9 = arith.constant 0 : index
      %c0_10 = arith.constant 0 : index
      %15 = vector.load %arg9[%c0_9, %c0_10] : memref<128x128xf32, #tpu.memory_space<vmem>>, vector<128x128xf32>
      %c0_11 = arith.constant 0 : index
      %c0_12 = arith.constant 0 : index
      %16 = vector.load %arg4[%c0_11, %c0_12] : memref<128x128xf32, #tpu.memory_space<vmem>>, vector<128x128xf32>
      %cst_13 = arith.constant dense<0.000000e+00> : vector<128x128xf32>
      %17 = tpu.matmul %15, %16, %cst_13 {dimension_numbers = #tpu.dot_dimension_numbers<[1], [0], [0], [1], [0, 0, 1, 1], [], []>} : vector<128x128xf32>, vector<128x128xf32>, vector<128x128xf32> -> vector<128x128xf32>
      %c0_14 = arith.constant 0 : index
      %c0_15 = arith.constant 0 : index
      %18 = vector.load %arg5[%c0_14, %c0_15] : memref<128x128xf32, #tpu.memory_space<vmem>>, vector<128x128xf32>
      %19 = arith.addf %17, %18 : vector<128x128xf32>
      %cst_16 = arith.constant 0.000000e+00 : f32
      %20 = vector.broadcast %cst_16 : f32 to vector<128x128xf32>
      %21 = arith.maximumf %19, %20 : vector<128x128xf32>
      %c0_17 = arith.constant 0 : index
      %c0_18 = arith.constant 0 : index
      %22 = vector.load %arg6[%c0_17, %c0_18] : memref<128x128xf32, #tpu.memory_space<vmem>>, vector<128x128xf32>
      %cst_19 = arith.constant dense<0.000000e+00> : vector<128x128xf32>
      %23 = tpu.matmul %21, %22, %cst_19 {dimension_numbers = #tpu.dot_dimension_numbers<[1], [0], [0], [1], [0, 0, 1, 1], [], []>} : vector<128x128xf32>, vector<128x128xf32>, vector<128x128xf32> -> vector<128x128xf32>
      %c0_20 = arith.constant 0 : index
      %c0_21 = arith.constant 0 : index
      %24 = vector.load %arg7[%c0_20, %c0_21] : memref<1x128xf32, #tpu.memory_space<vmem>>, vector<1x128xf32>
      %25 = vector.broadcast %24 : vector<1x128xf32> to vector<128x128xf32>
      %26 = arith.addf %23, %25 : vector<128x128xf32>
      %c0_22 = arith.constant 0 : index
      %c0_23 = arith.constant 0 : index
      %27 = vector.load %arg8[%c0_22, %c0_23] : memref<128x128xf32, #tpu.memory_space<vmem>>, vector<128x128xf32>
      tpu.vector_store %arg8[%c0_22, %c0_23], %26 {strides = array<i32>} : memref<128x128xf32, #tpu.memory_space<vmem>>, vector<128x128xf32>,
    } else {
    }
    return
  }
  func.func @transform_0(%arg0: i32, %arg1: i32) -> (i32, i32) {
    %c0_i32 = arith.constant 0 : i32
    return %arg0, %arg1 : i32, i32
  }
  func.func @transform_1(%arg0: i32, %arg1: i32) -> (i32, i32) {
    %c0_i32 = arith.constant 0 : i32
    %c0_i32_0 = arith.constant 0 : i32
    %c0_i32_1 = arith.constant 0 : i32
    return %c0_i32, %c0_i32_0 : i32, i32
  }
  func.func @transform_2(%arg0: i32, %arg1: i32) -> (i32, i32) {
    %c0_i32 = arith.constant 0 : i32
    %c0_i32_0 = arith.constant 0 : i32
    %c0_i32_1 = arith.constant 0 : i32
    return %c0_i32, %c0_i32_0 : i32, i32
  }
  func.func @transform_3(%arg0: i32, %arg1: i32) -> (i32, i32) {
    %c0_i32 = arith.constant 0 : i32
    %c0_i32_0 = arith.constant 0 : i32
    return %arg0, %c0_i32 : i32, i32
  }
  func.func @transform_4(%arg0: i32, %arg1: i32) -> (i32, i32) {
    %c0_i32 = arith.constant 0 : i32
    %c0_i32_0 = arith.constant 0 : i32
    %c0_i32_1 = arith.constant 0 : i32
    return %c0_i32, %c0_i32_0 : i32, i32
  }
  func.func @transform_5(%arg0: i32, %arg1: i32) -> (i32, i32) {
    %c0_i32 = arith.constant 0 : i32
    %c0_i32_0 = arith.constant 0 : i32
    %c0_i32_1 = arith.constant 0 : i32
    return %c0_i32, %c0_i32_0 : i32, i32
  }
  func.func @transform_6(%arg0: i32, %arg1: i32) -> (i32, i32) {
    %c0_i32 = arith.constant 0 : i32
    %c0_i32_0 = arith.constant 0 : i32
    return %arg0, %c0_i32 : i32, i32
  }
}

</mosaic_0001>

<bundles_post_ra>
// kernel: gnn_decoder_forward.1
= control target key start
LH: loop header
LB: loop body
LE: loop exit
PB: predicated region body
PF: predicated region fallthrough
CT: control target
= control target key end

     0   :  { %s911_s1 = inlined_call_operand.vmem [shape: bf16[128,128], index: 1, kind: input, shape index: {}]   ;;  %s912_s0 = inlined_call_operand.vmem [shape: bf16[128,128], index: 0, kind: input, shape index: {}]   ;;  %s913_s2 = inlined_call_operand.vmem [shape: f32[128,128], index: 2, kind: input, shape index: {}]   ;;  %s914_s4 = inlined_call_operand.vmem [shape: f32[128,128], index: 4, kind: input, shape index: {}]   ;;  %s915_s5 = inlined_call_operand.vmem [shape: f32[1,128], index: 5, kind: input, shape index: {}]   ;;  %s916_s3 = inlined_call_operand.vmem [shape: f32[128,128], index: 3, kind: input, shape index: {}]   ;;  %s917_s6 = inlined_call_operand.vmem [shape: f32[128,128], index: 6, kind: output, shape index: {}]  }
   0x1   :  { %v583_v0 = vld [vmem:[%s911_s1 + $0x38] sm:$0xff]  ;;  %v582_v1 = vld [vmem:[%s911_s1 + $0x30] sm:$0xff]  ;;  %v581_v2 = vld [vmem:[%s911_s1 + $0x28] sm:$0xff] }
   0x2   :  { %192 = vmatpush.bf16.msra.mxu0 %v583_v0  ;;  %592 = vmatpush.bf16.msra.mxu3 %v583_v0  ;;  %v580_v3 = vld [vmem:[%s911_s1 + $0x20] sm:$0xff]  ;;  %v579_v4 = vld [vmem:[%s911_s1 + $0x18] sm:$0xff]  ;;  %v578_v5 = vld [vmem:[%s911_s1 + $0x10] sm:$0xff] }
   0x3   :  { %v577_v6 = vld [vmem:[%s911_s1 + $0x8] sm:$0xff]  ;;  %v576_v7 = vld [vmem:[%s911_s1] sm:$0xff]  ;;  %v590_v9 = vld [vmem:[%s912_s0 + $0x30] sm:$0xff] }
   0x4   :  { %v584_v8 = vld [vmem:[%s912_s0] sm:$0xff]  ;;  %v585_v10 = vld [vmem:[%s912_s0 + $0x8] sm:$0xff]  ;;  %v591_v11 = vld [vmem:[%s912_s0 + $0x38] sm:$0xff] }
   0x5   :  { %v586_v12 = vld [vmem:[%s912_s0 + $0x10] sm:$0xff]  ;;  %v587_v13 = vld [vmem:[%s912_s0 + $0x18] sm:$0xff]  ;;  %v305_v16 = vld [vmem:[%s913_s2 + $0x68] sm:$0xff] }
   0x6   :  { %193 = vmatpush.bf16.msra.mxu0 %v582_v1  ;;  %593 = vmatpush.bf16.msra.mxu3 %v582_v1  ;;  %v307_v14 = vld [vmem:[%s913_s2 + $0x78] sm:$0xff]  ;;  %v306_v15 = vld [vmem:[%s913_s2 + $0x70] sm:$0xff]  ;;  %v304_v17 = vld [vmem:[%s913_s2 + $0x60] sm:$0xff] }
   0x7   :  { %324 = vmatpush.msra.mxu1 %v307_v14  ;;  %v303_v18 = vld [vmem:[%s913_s2 + $0x58] sm:$0xff]  ;;  %v302_v19 = vld [vmem:[%s913_s2 + $0x50] sm:$0xff]  ;;  %v301_v20 = vld [vmem:[%s913_s2 + $0x48] sm:$0xff] }
   0x8   :  { %v588_v21 = vld [vmem:[%s912_s0 + $0x20] sm:$0xff]  ;;  %v299_v23 = vld [vmem:[%s913_s2 + $0x38] sm:$0xff]  ;;  %v298_v24 = vld [vmem:[%s913_s2 + $0x30] sm:$0xff] }
   0x9   :  { %325 = vmatpush.msra.mxu1 %v306_v15  ;;  %v300_v22 = vld [vmem:[%s913_s2 + $0x40] sm:$0xff]  ;;  %v297_v25 = vld [vmem:[%s913_s2 + $0x28] sm:$0xff]  ;;  %v295_v27 = vld [vmem:[%s913_s2 + $0x18] sm:$0xff] }
   0xa   :  { %194 = vmatpush.bf16.msra.mxu0 %v581_v2  ;;  %594 = vmatpush.bf16.msra.mxu3 %v581_v2  ;;  %v296_v26 = vld [vmem:[%s913_s2 + $0x20] sm:$0xff]  ;;  %v294_v28 = vld [vmem:[%s913_s2 + $0x10] sm:$0xff]  ;;  %v293_v29 = vld [vmem:[%s913_s2 + $0x8] sm:$0xff] }
   0xb   :  { %326 = vmatpush.msra.mxu1 %v305_v16  ;;  %v589_v30 = vld [vmem:[%s912_s0 + $0x28] sm:$0xff]  ;;  %v292_v31 = vld [vmem:[%s913_s2] sm:$0xff]  ;;  %v420_v44 = vld [vmem:[%s914_s4 + $0x78] sm:$0xff] }
   0xc   :  { %v419_v45 = vld [vmem:[%s914_s4 + $0x70] sm:$0xff]  ;;  %425 = vmatpush.msra.mxu2 %v420_v44  ;;  %v418_v46 = vld [vmem:[%s914_s4 + $0x68] sm:$0xff]  ;;  %v417_v47 = vld [vmem:[%s914_s4 + $0x60] sm:$0xff] }
   0xd   :  { %327 = vmatpush.msra.mxu1 %v304_v17  ;;  %v416_v48 = vld [vmem:[%s914_s4 + $0x58] sm:$0xff]  ;;  %v415_v50 = vld [vmem:[%s914_s4 + $0x50] sm:$0xff]  ;;  %v414_v51 = vld [vmem:[%s914_s4 + $0x48] sm:$0xff] }
   0xe   :  { %195 = vmatpush.bf16.msra.mxu0 %v580_v3  ;;  %595 = vmatpush.bf16.msra.mxu3 %v580_v3  ;;  %v413_v52 = vld [vmem:[%s914_s4 + $0x40] sm:$0xff]  ;;  %v412_v53 = vld [vmem:[%s914_s4 + $0x38] sm:$0xff]  ;;  %v411_v55 = vld [vmem:[%s914_s4 + $0x30] sm:$0xff] }
   0xf   :  { %328 = vmatpush.msra.mxu1 %v303_v18  ;;  %426 = vmatpush.msra.mxu2 %v419_v45  ;;  %v410_v56 = vld [vmem:[%s914_s4 + $0x28] sm:$0xff]  ;;  %v409_v57 = vld [vmem:[%s914_s4 + $0x20] sm:$0xff]  ;;  %v408_v58 = vld [vmem:[%s914_s4 + $0x18] sm:$0xff] }
  0x10   :  { %v407_v61 = vld [vmem:[%s914_s4 + $0x10] sm:$0xff]  ;;  %v406_v62 = vld [vmem:[%s914_s4 + $0x8] sm:$0xff]  ;;  %v405_v63 = vld [vmem:[%s914_s4] sm:$0xff] }
  0x11   :  { %329 = vmatpush.msra.mxu1 %v302_v19  ;;  %427 = vmatpush.msra.mxu2 %v418_v46  ;;  %v308_v0 = vld [vmem:[%s916_s3] sm:$0xff] }
  0x12   :  { %196 = vmatpush.bf16.msra.mxu0 %v579_v4  ;;  %596 = vmatpush.bf16.msra.mxu3 %v579_v4  ;;  %v309_v4 = vld [vmem:[%s916_s3 + $0x8] sm:$0xff] }
  0x13   :  { %330 = vmatpush.msra.mxu1 %v301_v20  ;;  %428 = vmatpush.msra.mxu2 %v417_v47 }
  0x15   :  { %331 = vmatpush.msra.mxu1 %v300_v22  ;;  %429 = vmatpush.msra.mxu2 %v416_v48 }
  0x16   :  { %197 = vmatpush.bf16.msra.mxu0 %v578_v5  ;;  %597 = vmatpush.bf16.msra.mxu3 %v578_v5 }
  0x17   :  { %332 = vmatpush.msra.mxu1 %v299_v23  ;;  %430 = vmatpush.msra.mxu2 %v415_v50 }
  0x19   :  { %333 = vmatpush.msra.mxu1 %v298_v24  ;;  %431 = vmatpush.msra.mxu2 %v414_v51 }
  0x1a   :  { %198 = vmatpush.bf16.msra.mxu0 %v577_v6  ;;  %598 = vmatpush.bf16.msra.mxu3 %v577_v6 }
  0x1b   :  { %334 = vmatpush.msra.mxu1 %v297_v25  ;;  %432 = vmatpush.msra.mxu2 %v413_v52 }
  0x1d   :  { %335 = vmatpush.msra.mxu1 %v296_v26  ;;  %433 = vmatpush.msra.mxu2 %v412_v53 }
  0x1e   :  { %199 = vmatpush.bf16.msra.mxu0 %v576_v7  ;;  %599 = vmatpush.bf16.msra.mxu3 %v576_v7 }
  0x1f   :  { %336 = vmatpush.msra.mxu1 %v295_v27  ;;  %434 = vmatpush.msra.mxu2 %v411_v55 }
  0x21   :  { %200 = vmatmul.bf16.vlgmr.msra.gmra.mxu0 %v584_v8  ;;  %230 = vmatmul.bf16.vlgmr.msra.gmra.mxu3 %v590_v9  ;;  %v310_v8 = vld [vmem:[%s916_s3 + $0x10] sm:$0xff] }
  0x22   :  { %600 = vmatpush.msrb.mxu3 %v307_v14  ;;  %337 = vmatpush.msra.mxu1 %v294_v28  ;;  %v320_v14 = vld [vmem:[%s916_s3 + $0x60] sm:$0xff] }
  0x23   :  { %435 = vmatpush.msra.mxu2 %v410_v56 }
  0x24   :  { %601 = vmatpush.msrb.mxu3 %v306_v15  ;;  %338 = vmatpush.msra.mxu1 %v293_v29 }
  0x25   :  { %436 = vmatpush.msra.mxu2 %v409_v57 }
  0x26   :  { %602 = vmatpush.msrb.mxu3 %v305_v16  ;;  %339 = vmatpush.msra.mxu1 %v292_v31 }
  0x27   :  { %437 = vmatpush.msra.mxu2 %v408_v58 }
  0x28   :  { %603 = vmatpush.msrb.mxu3 %v304_v17 }
  0x29   :  { %438 = vmatpush.msra.mxu2 %v407_v61 }
  0x2a   :  { %604 = vmatpush.msrb.mxu3 %v303_v18 }
  0x2b   :  { %439 = vmatpush.msra.mxu2 %v406_v62 }
  0x2c   :  { %605 = vmatpush.msrb.mxu3 %v302_v19 }
  0x2d   :  { %440 = vmatpush.msra.mxu2 %v405_v63 }
  0x2e   :  { %606 = vmatpush.msrb.mxu3 %v301_v20  ;;  %v312_v20 = vld [vmem:[%s916_s3 + $0x20] sm:$0xff] }
  0x30   :  { %607 = vmatpush.msrb.mxu3 %v300_v22  ;;  %v321_v22 = vld [vmem:[%s916_s3 + $0x68] sm:$0xff] }
  0x31   :  { %205 = vmatmul.bf16.gmra.mxu0 %v585_v10  ;;  %235 = vmatmul.bf16.gmra.mxu3 %v591_v11 }
  0x32   :  { %608 = vmatpush.msrb.mxu3 %v299_v23 }
  0x34   :  { %609 = vmatpush.msrb.mxu3 %v298_v24 }
  0x36   :  { %610 = vmatpush.msrb.mxu3 %v297_v25 }
  0x38   :  { %611 = vmatpush.msrb.mxu3 %v296_v26 }
  0x3a   :  { %612 = vmatpush.msrb.mxu3 %v295_v27 }
  0x3c   :  { %613 = vmatpush.msrb.mxu3 %v294_v28  ;;  %v313_v28 = vld [vmem:[%s916_s3 + $0x28] sm:$0xff] }
  0x3e   :  { %614 = vmatpush.msrb.mxu3 %v293_v29 }
  0x40   :  { %615 = vmatpush.msrb.mxu3 %v292_v31 }
  0x41   :  { %210 = vmatmul.bf16.gmra.mxu0 %v586_v12  ;;  %v311_v12 = vld [vmem:[%s916_s3 + $0x18] sm:$0xff] }
  0x42   :  { %616 = vmatpush.msra.mxu3 %v420_v44  ;;  %v315_v44 = vld [vmem:[%s916_s3 + $0x38] sm:$0xff] }
  0x44   :  { %617 = vmatpush.msra.mxu3 %v419_v45 }
  0x46   :  { %618 = vmatpush.msra.mxu3 %v418_v46 }
  0x48   :  { %619 = vmatpush.msra.mxu3 %v417_v47 }
  0x4a   :  { %620 = vmatpush.msra.mxu3 %v416_v48  ;;  %v316_v48 = vld [vmem:[%s916_s3 + $0x40] sm:$0xff] }
  0x4c   :  { %621 = vmatpush.msra.mxu3 %v415_v50 }
  0x4e   :  { %622 = vmatpush.msra.mxu3 %v414_v51 }
  0x50   :  { %623 = vmatpush.msra.mxu3 %v413_v52  ;;  %v317_v52 = vld [vmem:[%s916_s3 + $0x48] sm:$0xff] }
  0x51   :  { %215 = vmatmul.bf16.gmra.mxu0 %v587_v13 }
  0x52   :  { %624 = vmatpush.msra.mxu3 %v412_v53 }
  0x54   :  { %625 = vmatpush.msra.mxu3 %v411_v55 }
  0x56   :  { %626 = vmatpush.msra.mxu3 %v410_v56  ;;  %v318_v56 = vld [vmem:[%s916_s3 + $0x50] sm:$0xff] }
  0x58   :  { %627 = vmatpush.msra.mxu3 %v409_v57 }
  0x5a   :  { %628 = vmatpush.msra.mxu3 %v408_v58 }
  0x5c   :  { %629 = vmatpush.msra.mxu3 %v407_v61 }
  0x5e   :  { %630 = vmatpush.msra.mxu3 %v406_v62 }
  0x60   :  { %631 = vmatpush.msra.mxu3 %v405_v63 }
  0x61   :  { %220 = vmatmul.bf16.gmra.mxu0 %v588_v21 }
  0x71   :  { %225 = vmatmul.bf16.gmra.mxu0 %v589_v30  ;;  %v322_v30 = vld [vmem:[%s916_s3 + $0x70] sm:$0xff] }
  0x9e   :  { %v201_v32 = vpop.f32.mrf.mxu0 }
  0x9f   :  { %340 = vmatmul.f32.vlgmr.msra.gmra.mxu1 %v201_v32 }
  0xa4   :  { %v231_v35 = vpop.f32.mrf.mxu3 }
  0xa5   :  { %376 = vmatmul.f32.vlgmr.msrb.gmra.mxu3 %v231_v35 }
  0xa6   :  { %v203_v33 = vpop.f32.mrf.mxu0 }
  0xa7   :  { %343 = vmatmul.f32.gmra.mxu1 %v203_v33 }
  0xac   :  { %v233_v37 = vpop.f32.mrf.mxu3 }
  0xad   :  { %379 = vmatmul.f32.gmra.mxu3 %v233_v37 }
  0xae   :  { %v206_v34 = vpop.f32.mrf.mxu0 }
  0xaf   :  { %346 = vmatmul.f32.gmra.mxu1 %v206_v34 }
  0xb4   :  { %v236_v39 = vpop.f32.mrf.mxu3 }
  0xb5   :  { %382 = vmatmul.f32.gmra.mxu3 %v236_v39 }
  0xb6   :  { %v208_v36 = vpop.f32.mrf.mxu0 }
  0xb7   :  { %349 = vmatmul.f32.gmra.mxu1 %v208_v36  ;;  %v314_v36 = vld [vmem:[%s916_s3 + $0x30] sm:$0xff] }
  0xbc   :  { %v238_v41 = vpop.f32.mrf.mxu3 }
  0xbd   :  { %385 = vmatmul.f32.gmra.mxu3 %v238_v41 }
  0xbe   :  { %v211_v38 = vpop.f32.mrf.mxu0 }
  0xbf   :  { %352 = vmatmul.f32.gmra.mxu1 %v211_v38  ;;  %v323_v38 = vld [vmem:[%s916_s3 + $0x78] sm:$0xff] }
  0xc6   :  { %v213_v40 = vpop.f32.mrf.mxu0 }
  0xc7   :  { %355 = vmatmul.f32.gmra.mxu1 %v213_v40 }
  0xce   :  { %v216_v42 = vpop.f32.mrf.mxu0 }
  0xcf   :  { %358 = vmatmul.f32.gmra.mxu1 %v216_v42 }
  0xd6   :  { %v218_v43 = vpop.f32.mrf.mxu0 }
  0xd7   :  { %361 = vmatmul.f32.gmra.mxu1 %v218_v43 }
  0xde   :  { %v221_v49 = vpop.f32.mrf.mxu0 }
  0xdf   :  { %364 = vmatmul.f32.gmra.mxu1 %v221_v49 }
  0xe6   :  { %v223_v54 = vpop.f32.mrf.mxu0 }
  0xe7   :  { %367 = vmatmul.f32.gmra.mxu1 %v223_v54 }
  0xee   :  { %v226_v59 = vpop.f32.mrf.mxu0 }
  0xef   :  { %370 = vmatmul.f32.gmra.mxu1 %v226_v59 }
  0xf6   :  { %v228_v60 = vpop.f32.mrf.mxu0 }
  0xf7   :  { %373 = vmatmul.f32.gmra.mxu1 %v228_v60  ;;  %v319_v60 = vld [vmem:[%s916_s3 + $0x58] sm:$0xff] }
 0x11c   :  { %v341_v1 = vpop.f32.mrf.mxu1 }
 0x11d   :  { %v342_v2 = vadd.f32 %v341_v1, %v308_v0  ;;  %v632_v0 = vld [vmem:[%s915_s5] ss:$0 sm:$0xff] }
 0x11f   :  { %v389_v3 = vmax.f32 %v342_v2, 0.0 }
 0x121   :  { %441 = vmatmul.f32.vlgmr.msra.gmra.mxu2 %v389_v3 }
 0x124   :  { %v344_v5 = vpop.f32.mrf.mxu1 }
 0x125   :  { %v345_v6 = vadd.f32 %v344_v5, %v309_v4 }
 0x127   :  { %v390_v7 = vmax.f32 %v345_v6, 0.0 }
 0x128   :  { %v377_v15 = vpop.f32.mrf.mxu3 }
 0x129   :  { %444 = vmatmul.f32.gmra.mxu2 %v390_v7  ;;  %v378_v17 = vadd.f32 %v377_v15, %v320_v14 }
 0x12b   :  { %v401_v19 = vmax.f32 %v378_v17, 0.0 }
 0x12c   :  { %v347_v9 = vpop.f32.mrf.mxu1 }
 0x12d   :  { %v348_v10 = vadd.f32 %v347_v9, %v310_v8  ;;  %477 = vmatmul.f32.vlgmr.msra.gmra.mxu3 %v401_v19 }
 0x12f   :  { %v391_v11 = vmax.f32 %v348_v10, 0.0 }
 0x130   :  { %v380_v23 = vpop.f32.mrf.mxu3 }
 0x131   :  { %447 = vmatmul.f32.gmra.mxu2 %v391_v11  ;;  %v381_v25 = vadd.f32 %v380_v23, %v321_v22 }
 0x133   :  { %v402_v27 = vmax.f32 %v381_v25, 0.0 }
 0x134   :  { %v350_v13 = vpop.f32.mrf.mxu1 }
 0x135   :  { %v351_v16 = vadd.f32 %v350_v13, %v311_v12  ;;  %480 = vmatmul.f32.gmra.mxu3 %v402_v27 }
 0x137   :  { %v392_v18 = vmax.f32 %v351_v16, 0.0 }
 0x138   :  { %v383_v31 = vpop.f32.mrf.mxu3 }
 0x139   :  { %450 = vmatmul.f32.gmra.mxu2 %v392_v18  ;;  %v384_v33 = vadd.f32 %v383_v31, %v322_v30 }
 0x13b   :  { %v403_v35 = vmax.f32 %v384_v33, 0.0 }
 0x13c   :  { %v353_v21 = vpop.f32.mrf.mxu1 }
 0x13d   :  { %v354_v24 = vadd.f32 %v353_v21, %v312_v20  ;;  %483 = vmatmul.f32.gmra.mxu3 %v403_v35 }
 0x13f   :  { %v393_v26 = vmax.f32 %v354_v24, 0.0 }
 0x140   :  { %v386_v39 = vpop.f32.mrf.mxu3 }
 0x141   :  { %453 = vmatmul.f32.gmra.mxu2 %v393_v26  ;;  %v387_v41 = vadd.f32 %v386_v39, %v323_v38 }
 0x143   :  { %v404_v43 = vmax.f32 %v387_v41, 0.0 }
 0x144   :  { %v356_v29 = vpop.f32.mrf.mxu1 }
 0x145   :  { %v357_v32 = vadd.f32 %v356_v29, %v313_v28  ;;  %486 = vmatmul.f32.gmra.mxu3 %v404_v43 }
 0x147   :  { %v394_v34 = vmax.f32 %v357_v32, 0.0 }
 0x149   :  { %456 = vmatmul.f32.gmra.mxu2 %v394_v34 }
 0x14c   :  { %v359_v37 = vpop.f32.mrf.mxu1 }
 0x14d   :  { %v360_v40 = vadd.f32 %v359_v37, %v314_v36 }
 0x14f   :  { %v395_v42 = vmax.f32 %v360_v40, 0.0 }
 0x151   :  { %459 = vmatmul.f32.gmra.mxu2 %v395_v42 }
 0x154   :  { %v362_v45 = vpop.f32.mrf.mxu1 }
 0x155   :  { %v363_v46 = vadd.f32 %v362_v45, %v315_v44 }
 0x157   :  { %v396_v47 = vmax.f32 %v363_v46, 0.0 }
 0x159   :  { %462 = vmatmul.f32.gmra.mxu2 %v396_v47 }
 0x15c   :  { %v365_v49 = vpop.f32.mrf.mxu1 }
 0x15d   :  { %v366_v50 = vadd.f32 %v365_v49, %v316_v48 }
 0x15f   :  { %v397_v51 = vmax.f32 %v366_v50, 0.0 }
 0x161   :  { %465 = vmatmul.f32.gmra.mxu2 %v397_v51 }
 0x164   :  { %v368_v53 = vpop.f32.mrf.mxu1 }
 0x165   :  { %v369_v54 = vadd.f32 %v368_v53, %v317_v52 }
 0x167   :  { %v398_v55 = vmax.f32 %v369_v54, 0.0 }
 0x169   :  { %468 = vmatmul.f32.gmra.mxu2 %v398_v55 }
 0x16c   :  { %v371_v57 = vpop.f32.mrf.mxu1 }
 0x16d   :  { %v372_v58 = vadd.f32 %v371_v57, %v318_v56 }
 0x16f   :  { %v399_v59 = vmax.f32 %v372_v58, 0.0 }
 0x171   :  { %471 = vmatmul.f32.gmra.mxu2 %v399_v59 }
 0x174   :  { %v374_v61 = vpop.f32.mrf.mxu1 }
 0x175   :  { %v375_v62 = vadd.f32 %v374_v61, %v319_v60 }
 0x177   :  { %v400_v63 = vmax.f32 %v375_v62, 0.0 }
 0x179   :  { %474 = vmatmul.f32.gmra.mxu2 %v400_v63 }
 0x1a4   :  { %v442_v1 = vpop.f32.mrf.mxu2 }
 0x1a5   :  { %v443_v2 = vadd.f32 %v632_v0, %v442_v1 }
 0x1a7   :  { %490 = vst [vmem:[%s917_s6] sm:$0xff] %v443_v2 }
 0x1ac   :  { %v445_v3 = vpop.f32.mrf.mxu2 }
 0x1ad   :  { %v446_v4 = vadd.f32 %v632_v0, %v445_v3 }
 0x1af   :  { %491 = vst [vmem:[%s917_s6 + $0x8] sm:$0xff] %v446_v4 }
 0x1b0   :  { %v478_v8 = vpop.f32.mrf.mxu3 }
 0x1b1   :  { %v479_v10 = vadd.f32 %v632_v0, %v478_v8 }
 0x1b3   :  { %502 = vst [vmem:[%s917_s6 + $0x60] sm:$0xff] %v479_v10 }
 0x1b4   :  { %v448_v5 = vpop.f32.mrf.mxu2 }
 0x1b5   :  { %v449_v6 = vadd.f32 %v632_v0, %v448_v5 }
 0x1b7   :  { %492 = vst [vmem:[%s917_s6 + $0x10] sm:$0xff] %v449_v6 }
 0x1b8   :  { %v481_v12 = vpop.f32.mrf.mxu3 }
 0x1b9   :  { %v482_v14 = vadd.f32 %v632_v0, %v481_v12 }
 0x1bb   :  { %503 = vst [vmem:[%s917_s6 + $0x68] sm:$0xff] %v482_v14 }
 0x1bc   :  { %v451_v7 = vpop.f32.mrf.mxu2 }
 0x1bd   :  { %v452_v9 = vadd.f32 %v632_v0, %v451_v7 }
 0x1bf   :  { %493 = vst [vmem:[%s917_s6 + $0x18] sm:$0xff] %v452_v9 }
 0x1c0   :  { %v484_v16 = vpop.f32.mrf.mxu3 }
 0x1c1   :  { %v485_v18 = vadd.f32 %v632_v0, %v484_v16 }
 0x1c3   :  { %504 = vst [vmem:[%s917_s6 + $0x70] sm:$0xff] %v485_v18 }
 0x1c4   :  { %v454_v11 = vpop.f32.mrf.mxu2 }
 0x1c5   :  { %v455_v13 = vadd.f32 %v632_v0, %v454_v11 }
 0x1c7   :  { %494 = vst [vmem:[%s917_s6 + $0x20] sm:$0xff] %v455_v13 }
 0x1c8   :  { %v487_v20 = vpop.f32.mrf.mxu3 }
 0x1c9   :  { %v488_v22 = vadd.f32 %v632_v0, %v487_v20 }
 0x1cb   :  { %505 = vst [vmem:[%s917_s6 + $0x78] sm:$0xff] %v488_v22 }
 0x1cc   :  { %v457_v15 = vpop.f32.mrf.mxu2 }
 0x1cd   :  { %v458_v17 = vadd.f32 %v632_v0, %v457_v15 }
 0x1cf   :  { %495 = vst [vmem:[%s917_s6 + $0x28] sm:$0xff] %v458_v17 }
 0x1d4   :  { %v460_v19 = vpop.f32.mrf.mxu2 }
 0x1d5   :  { %v461_v21 = vadd.f32 %v632_v0, %v460_v19 }
 0x1d7   :  { %496 = vst [vmem:[%s917_s6 + $0x30] sm:$0xff] %v461_v21 }
 0x1dc   :  { %v463_v23 = vpop.f32.mrf.mxu2 }
 0x1dd   :  { %v464_v24 = vadd.f32 %v632_v0, %v463_v23 }
 0x1df   :  { %497 = vst [vmem:[%s917_s6 + $0x38] sm:$0xff] %v464_v24 }
 0x1e4   :  { %v466_v25 = vpop.f32.mrf.mxu2 }
 0x1e5   :  { %v467_v26 = vadd.f32 %v632_v0, %v466_v25 }
 0x1e7   :  { %498 = vst [vmem:[%s917_s6 + $0x40] sm:$0xff] %v467_v26 }
 0x1ec   :  { %v469_v27 = vpop.f32.mrf.mxu2 }
 0x1ed   :  { %v470_v28 = vadd.f32 %v632_v0, %v469_v27 }
 0x1ef   :  { %499 = vst [vmem:[%s917_s6 + $0x48] sm:$0xff] %v470_v28 }
 0x1f4   :  { %v472_v29 = vpop.f32.mrf.mxu2 }
 0x1f5   :  { %v473_v30 = vadd.f32 %v632_v0, %v472_v29 }
 0x1f7   :  { %500 = vst [vmem:[%s917_s6 + $0x50] sm:$0xff] %v473_v30 }
 0x1fc   :  { %v475_v31 = vpop.f32.mrf.mxu2 }
 0x1fd   :  { %v476_v32 = vadd.f32 %v632_v0, %v475_v31 }
 0x1ff   :  { %501 = vst [vmem:[%s917_s6 + $0x58] sm:$0xff] %v476_v32 }

</bundles_post_ra>
